<compile_context>
chip_gen: v7x
topology: tpu7x:2x2x1
jax: 0.10.0
libtpu: 0.0.40
codegen_flags: <defaults>
</compile_context>

<pallas_src>
import functools

import jax
import jax.numpy as jnp
from jax import lax
from jax.experimental import pallas as pl
from jax.experimental.pallas import tpu as pltpu

LANE = 128


def _round_up(v, m):
    return (v + m - 1) // m * m


def gcn_encoder_kernel(x_ref, adj_ref, w1_ref, b1_ref, wcat_ref, bcat_ref,
                       out_ref, *, n_latent, propagate_first):
    x = x_ref[...]        # (N, F)
    adj = adj_ref[...]    # (N, N)

    # --- GC layer 1: h = relu(adj @ (x @ W1) + b1) -------------------------
    if propagate_first:
        # Exact reassociation: (adj @ x) @ W1.  The N x N propagation runs at
        # the narrow feature width F instead of the padded hidden width.
        ax = jnp.dot(adj, x, preferred_element_type=jnp.float32)
        h = jnp.dot(ax, w1_ref[...], preferred_element_type=jnp.float32)
    else:
        support1 = jnp.dot(x, w1_ref[...], preferred_element_type=jnp.float32)
        h = jnp.dot(adj, support1, preferred_element_type=jnp.float32)
    h = jnp.maximum(h + b1_ref[...], 0.0)

    # F.dropout(..., training=self.training): inference mode -> identity.
    # TODO(synk): training-mode dropout (pltpu.prng_*) not implemented; eval semantics only.

    # --- fused mu | log_sigma head: one matmul pair, 128-lane output slab ---
    scat = jnp.dot(h, wcat_ref[...], preferred_element_type=jnp.float32)
    p = jnp.dot(adj, scat, preferred_element_type=jnp.float32) + bcat_ref[...]

    # exp only on the sigma columns [n_latent, 2*n_latent); mu columns pass
    # through; pad columns stay zero.  Full-vreg select, no sub-lane slicing.
    col = lax.broadcasted_iota(jnp.int32, p.shape, dimension=1)
    is_sig = (col >= n_latent) & (col < 2 * n_latent)
    out_ref[...] = jnp.where(is_sig, jnp.exp(p), p)


def gcn_encoder(x, adj, params):
    """x: (B, N, F) or (N, F); adj: (B, N, N) or (N, N). Returns (mu, sigma)."""
    squeeze = x.ndim == 2
    if squeeze:
        x, adj = x[None], adj[None]
    B, N, F = x.shape
    n_hid = params["w1"].shape[1]
    n_latent = params["wmu"].shape[1]

    hid_p = _round_up(n_hid, LANE)          # padded hidden width (lane-dense)
    out_p = _round_up(2 * n_latent, LANE)   # padded fused-head width

    # Propagate before the feature matmul when the feature width is narrower
    # than the padded hidden width (fewer FLOPs, identical math).
    propagate_first = F < hid_p

    # Host-side head fusion + zero padding (exact: padded cols/rows are zero).
    w1 = jnp.zeros((F, hid_p), jnp.float32).at[:, :n_hid].set(params["w1"])
    b1 = jnp.zeros((1, hid_p), jnp.float32).at[:, :n_hid].set(params["b1"])
    wcat = jnp.zeros((hid_p, out_p), jnp.float32)
    wcat = wcat.at[:n_hid, :n_latent].set(params["wmu"])
    wcat = wcat.at[:n_hid, n_latent:2 * n_latent].set(params["wsig"])
    bcat = jnp.zeros((1, out_p), jnp.float32)
    bcat = bcat.at[:, :n_latent].set(params["bmu"])
    bcat = bcat.at[:, n_latent:2 * n_latent].set(params["bsig"])

    if propagate_first:
        layer1_flops = 2 * B * (N * N * F + N * F * hid_p)
    else:
        layer1_flops = 2 * B * (N * F * hid_p + N * N * hid_p)
    flops = layer1_flops + 2 * B * (N * hid_p * out_p + N * N * out_p)
    bytes_accessed = 4 * (x.size + adj.size + w1.size + b1.size
                          + wcat.size + bcat.size + B * N * out_p)
    cost = pl.CostEstimate(flops=flops,
                           transcendentals=B * N * out_p,
                           bytes_accessed=bytes_accessed)

    kernel = functools.partial(gcn_encoder_kernel, n_latent=n_latent,
                               propagate_first=propagate_first)

    # Per-graph blocks (batch axis squeezed) vs. grid-invariant (resident) weights.
    def graph_spec(shape):
        return pl.BlockSpec((pl.Squeezed(),) + shape, lambda b: (b, 0, 0))

    def shared_spec(shape):
        return pl.BlockSpec(shape, lambda b: (0, 0))

    out = pl.pallas_call(
        kernel,
        out_shape=jax.ShapeDtypeStruct((B, N, out_p), jnp.float32),
        grid=(B,),
        in_specs=[
            graph_spec((N, F)),           # x
            graph_spec((N, N)),           # adj
            shared_spec((F, hid_p)),      # W1 (padded)
            shared_spec((1, hid_p)),      # b1 (padded)
            shared_spec((hid_p, out_p)),  # [Wmu | Wsig] (padded)
            shared_spec((1, out_p)),      # [bmu | bsig] (padded)
        ],
        out_specs=graph_spec((N, out_p)),
        compiler_params=pltpu.CompilerParams(
            dimension_semantics=("parallel",)),
        cost_estimate=cost,
    )(x, adj, w1, b1, wcat, bcat)

    mu = out[..., :n_latent]
    sig = out[..., n_latent:2 * n_latent]
    if squeeze:
        mu, sig = mu[0], sig[0]
    return mu, sig


def init_params(key, n_feat, n_hid, n_latent):
    k1, k2, k3 = jax.random.split(key, 3)

    def glorot(k, fan_in, fan_out):
        lim = jnp.sqrt(6.0 / (fan_in + fan_out))
        return jax.random.uniform(k, (fan_in, fan_out), jnp.float32, -lim, lim)

    return {
        "w1":   glorot(k1, n_feat, n_hid),
        "b1":   jnp.zeros((1, n_hid), jnp.float32),
        "wmu":  glorot(k2, n_hid, n_latent),
        "bmu":  jnp.zeros((1, n_latent), jnp.float32),
        "wsig": glorot(k3, n_hid, n_latent),
        "bsig": jnp.zeros((1, n_latent), jnp.float32),
    }


def reference_forward(x, adj, p):
    h = jnp.maximum(adj @ (x @ p["w1"]) + p["b1"], 0.0)
    mu = adj @ (h @ p["wmu"]) + p["bmu"]
    sig = jnp.exp(adj @ (h @ p["wsig"]) + p["bsig"])
    return mu, sig


if __name__ == "__main__":
    batch, n_nodes, n_feat, n_hid, n_latent = 4, 64, 32, 32, 16

    key = jax.random.PRNGKey(0)
    kx, ka, kp = jax.random.split(key, 3)

    # Node features: a small batch of graphs.
    x = jax.random.normal(kx, (batch, n_nodes, n_feat), jnp.float32)

    # Symmetric-normalized dense adjacency with self-loops (deterministic).
    a_raw = (jax.random.uniform(ka, (batch, n_nodes, n_nodes)) > 0.85)
    a_raw = a_raw.astype(jnp.float32)
    a_sym = jnp.clip(a_raw + jnp.swapaxes(a_raw, -1, -2), 0.0, 1.0)
    a_sym = a_sym + jnp.eye(n_nodes, dtype=jnp.float32)
    deg_inv_sqrt = 1.0 / jnp.sqrt(a_sym.sum(axis=-1))
    adj = a_sym * deg_inv_sqrt[..., :, None] * deg_inv_sqrt[..., None, :]

    params = init_params(kp, n_feat, n_hid, n_latent)

    mu, sig = gcn_encoder(x, adj, params)
    jax.block_until_ready((mu, sig))

    mu_ref, sig_ref = reference_forward(x, adj, params)
    assert mu.shape == (batch, n_nodes, n_latent)
    assert sig.shape == (batch, n_nodes, n_latent)
    assert jnp.allclose(mu, mu_ref, atol=1e-4, rtol=1e-4)
    assert jnp.allclose(sig, sig_ref, atol=1e-4, rtol=1e-4)

    # Single-graph (unbatched) path still works.
    mu1, sig1 = gcn_encoder(x[0], adj[0], params)
    jax.block_until_ready((mu1, sig1))
    assert jnp.allclose(mu1, mu_ref[0], atol=1e-4, rtol=1e-4)
    assert jnp.allclose(sig1, sig_ref[0], atol=1e-4, rtol=1e-4)

    print("KERNEL_OK")
</pallas_src>

<mosaic_0001>
module attributes {stable_mosaic.version = 11 : i64} {
  func.func @gcn_encoder_kernel(%arg0: i32, %arg1: memref<1x64x32xf32, #tpu.memory_space<vmem>>, %arg2: memref<1x64x64xf32, #tpu.memory_space<vmem>>, %arg3: memref<32x128xf32, #tpu.memory_space<vmem>>, %arg4: memref<1x128xf32, #tpu.memory_space<vmem>>, %arg5: memref<128x128xf32, #tpu.memory_space<vmem>>, %arg6: memref<1x128xf32, #tpu.memory_space<vmem>>, %arg7: memref<1x64x128xf32, #tpu.memory_space<vmem>>) attributes {dimension_semantics = [#tpu.dimension_semantics<parallel>], iteration_bounds = array<i64: 4>, scalar_prefetch = 0 : i64, scratch_operands = 0 : i64, tpu.core_type = #tpu.core_type<tc>, window_params = [{transform_indices = @transform_0, window_bounds = array<i64: 1, 64, 32>}, {transform_indices = @transform_1, window_bounds = array<i64: 1, 64, 64>}, {pipeline_mode = #tpu.pipeline_mode<synchronous>, transform_indices = @transform_2, window_bounds = array<i64: 32, 128>}, {pipeline_mode = #tpu.pipeline_mode<synchronous>, transform_indices = @transform_3, window_bounds = array<i64: 1, 128>}, {pipeline_mode = #tpu.pipeline_mode<synchronous>, transform_indices = @transform_4, window_bounds = array<i64: 128, 128>}, {pipeline_mode = #tpu.pipeline_mode<synchronous>, transform_indices = @transform_5, window_bounds = array<i64: 1, 128>}, {transform_indices = @transform_6, window_bounds = array<i64: 1, 64, 128>}]} {
    %c0 = arith.constant 0 : index
    %c0_0 = arith.constant 0 : index
    %c0_1 = arith.constant 0 : index
    %0 = vector.load %arg1[%c0, %c0_0, %c0_1] : memref<1x64x32xf32, #tpu.memory_space<vmem>>, vector<1x64x32xf32>
    %1 = vector.shape_cast %0 : vector<1x64x32xf32> to vector<64x32xf32>
    %c0_2 = arith.constant 0 : index
    %c0_3 = arith.constant 0 : index
    %c0_4 = arith.constant 0 : index
    %2 = vector.load %arg2[%c0_2, %c0_3, %c0_4] : memref<1x64x64xf32, #tpu.memory_space<vmem>>, vector<1x64x64xf32>
    %3 = vector.shape_cast %2 : vector<1x64x64xf32> to vector<64x64xf32>
    %cst = arith.constant dense<0.000000e+00> : vector<64x32xf32>
    %4 = tpu.matmul %3, %1, %cst {dimension_numbers = #tpu.dot_dimension_numbers<[1], [0], [0], [1], [0, 0, 1, 1], [], []>} : vector<64x64xf32>, vector<64x32xf32>, vector<64x32xf32> -> vector<64x32xf32>
    %c0_5 = arith.constant 0 : index
    %c0_6 = arith.constant 0 : index
    %5 = vector.load %arg3[%c0_5, %c0_6] : memref<32x128xf32, #tpu.memory_space<vmem>>, vector<32x128xf32>
    %cst_7 = arith.constant dense<0.000000e+00> : vector<64x128xf32>
    %6 = tpu.matmul %4, %5, %cst_7 {dimension_numbers = #tpu.dot_dimension_numbers<[1], [0], [0], [1], [0, 0, 1, 1], [], []>} : vector<64x32xf32>, vector<32x128xf32>, vector<64x128xf32> -> vector<64x128xf32>
    %c0_8 = arith.constant 0 : index
    %c0_9 = arith.constant 0 : index
    %7 = vector.load %arg4[%c0_8, %c0_9] : memref<1x128xf32, #tpu.memory_space<vmem>>, vector<1x128xf32>
    %8 = vector.broadcast %7 : vector<1x128xf32> to vector<64x128xf32>
    %9 = arith.addf %6, %8 : vector<64x128xf32>
    %cst_10 = arith.constant 0.000000e+00 : f32
    %10 = vector.broadcast %cst_10 : f32 to vector<64x128xf32>
    %11 = arith.maximumf %9, %10 : vector<64x128xf32>
    %c0_11 = arith.constant 0 : index
    %c0_12 = arith.constant 0 : index
    %12 = vector.load %arg5[%c0_11, %c0_12] : memref<128x128xf32, #tpu.memory_space<vmem>>, vector<128x128xf32>
    %cst_13 = arith.constant dense<0.000000e+00> : vector<64x128xf32>
    %13 = tpu.matmul %11, %12, %cst_13 {dimension_numbers = #tpu.dot_dimension_numbers<[1], [0], [0], [1], [0, 0, 1, 1], [], []>} : vector<64x128xf32>, vector<128x128xf32>, vector<64x128xf32> -> vector<64x128xf32>
    %cst_14 = arith.constant dense<0.000000e+00> : vector<64x128xf32>
    %14 = tpu.matmul %3, %13, %cst_14 {dimension_numbers = #tpu.dot_dimension_numbers<[1], [0], [0], [1], [0, 0, 1, 1], [], []>} : vector<64x64xf32>, vector<64x128xf32>, vector<64x128xf32> -> vector<64x128xf32>
    %c0_15 = arith.constant 0 : index
    %c0_16 = arith.constant 0 : index
    %15 = vector.load %arg6[%c0_15, %c0_16] : memref<1x128xf32, #tpu.memory_space<vmem>>, vector<1x128xf32>
    %16 = vector.broadcast %15 : vector<1x128xf32> to vector<64x128xf32>
    %17 = arith.addf %14, %16 : vector<64x128xf32>
    %18 = tpu.iota {dimensions = array<i32: 1>} : vector<64x128xi32>
    %c16_i32 = arith.constant 16 : i32
    %19 = vector.broadcast %c16_i32 : i32 to vector<64x128xi32>
    %20 = arith.cmpi sge, %18, %19 : vector<64x128xi32>
    %c32_i32 = arith.constant 32 : i32
    %21 = vector.broadcast %c32_i32 : i32 to vector<64x128xi32>
    %22 = arith.cmpi slt, %18, %21 : vector<64x128xi32>
    %23 = arith.andi %20, %22 : vector<64x128xi1>
    %24 = math.exp %17 : vector<64x128xf32>
    %25 = arith.select %23, %24, %17 : vector<64x128xi1>, vector<64x128xf32>
    %c0_17 = arith.constant 0 : index
    %c0_18 = arith.constant 0 : index
    %c0_19 = arith.constant 0 : index
    %26 = vector.load %arg7[%c0_17, %c0_18, %c0_19] : memref<1x64x128xf32, #tpu.memory_space<vmem>>, vector<1x64x128xf32>
    %27 = vector.shape_cast %26 : vector<1x64x128xf32> to vector<64x128xf32>
    %28 = vector.shape_cast %25 : vector<64x128xf32> to vector<1x64x128xf32>
    tpu.vector_store %arg7[%c0_17, %c0_18, %c0_19], %28 {strides = array<i32>} : memref<1x64x128xf32, #tpu.memory_space<vmem>>, vector<1x64x128xf32>,
    return
  }
  func.func @transform_0(%arg0: i32) -> (i32, i32, i32) {
    %c0_i32 = arith.constant 0 : i32
    %c0_i32_0 = arith.constant 0 : i32
    %c0_i32_1 = arith.constant 0 : i32
    return %arg0, %c0_i32, %c0_i32_0 : i32, i32, i32
  }
  func.func @transform_1(%arg0: i32) -> (i32, i32, i32) {
    %c0_i32 = arith.constant 0 : i32
    %c0_i32_0 = arith.constant 0 : i32
    %c0_i32_1 = arith.constant 0 : i32
    return %arg0, %c0_i32, %c0_i32_0 : i32, i32, i32
  }
  func.func @transform_2(%arg0: i32) -> (i32, i32) {
    %c0_i32 = arith.constant 0 : i32
    %c0_i32_0 = arith.constant 0 : i32
    %c0_i32_1 = arith.constant 0 : i32
    return %c0_i32, %c0_i32_0 : i32, i32
  }
  func.func @transform_3(%arg0: i32) -> (i32, i32) {
    %c0_i32 = arith.constant 0 : i32
    %c0_i32_0 = arith.constant 0 : i32
    %c0_i32_1 = arith.constant 0 : i32
    return %c0_i32, %c0_i32_0 : i32, i32
  }
  func.func @transform_4(%arg0: i32) -> (i32, i32) {
    %c0_i32 = arith.constant 0 : i32
    %c0_i32_0 = arith.constant 0 : i32
    %c0_i32_1 = arith.constant 0 : i32
    return %c0_i32, %c0_i32_0 : i32, i32
  }
  func.func @transform_5(%arg0: i32) -> (i32, i32) {
    %c0_i32 = arith.constant 0 : i32
    %c0_i32_0 = arith.constant 0 : i32
    %c0_i32_1 = arith.constant 0 : i32
    return %c0_i32, %c0_i32_0 : i32, i32
  }
  func.func @transform_6(%arg0: i32) -> (i32, i32, i32) {
    %c0_i32 = arith.constant 0 : i32
    %c0_i32_0 = arith.constant 0 : i32
    %c0_i32_1 = arith.constant 0 : i32
    return %arg0, %c0_i32, %c0_i32_0 : i32, i32, i32
  }
}

</mosaic_0001>

<bundles_post_ra>
// kernel: tpu_custom_call.1
= control target key start
LH: loop header
LB: loop body
LE: loop exit
PB: predicated region body
PF: predicated region fallthrough
CT: control target
= control target key end

     0   :  { %11 = vsyncpa [#allocation3], 0  ;;  %s1743_s0 = inlined_call_operand.vmem [shape: f32[4,64,32], index: 0, kind: input, shape index: {}]   ;;  %s1744_s1 = inlined_call_operand.vmem [shape: f32[4,64,64], index: 1, kind: input, shape index: {}]   ;;  %s1745_s2 = inlined_call_operand.hbm [shape: f32[32,128], index: 2, kind: input, shape index: {}]   ;;  %s1746_s3 = inlined_call_operand.vmem [shape: f32[1,128], index: 3, kind: input, shape index: {}]   ;;  %s1747_s4 = inlined_call_operand.vmem [shape: f32[128,128], index: 4, kind: input, shape index: {}]   ;;  %s1748_s5 = inlined_call_operand.vmem [shape: f32[1,128], index: 5, kind: input, shape index: {}]   ;;  %s1749_s6 = inlined_call_operand.hbm [shape: f32[4,64,128], index: 6, kind: output, shape index: {}]  }
   0x1   :  { %12 = vsyncpa [#allocation4], 0 }
   0x2   :  { %14 = vsyncpa [#allocation4 + $0x1], 0  ;;  %s1462_s21 = smov 0   ;;  %s1464_s22 = smov 0  }
   0x3   :  { %s1466_s23 = smov 0   ;;  %s1468_s24 = smov 0  }
   0x4 LB: > { %s1483_s25 = sadd.s32 4294967295, %s1419_s24   ;;  %s950_s26 = sadd.s32 4294967294, %s1419_s24   ;;  %s1419_s24 = sphi %s1468_s24, %s1767_s24   ;;  %s1415_s23 = sphi %s1466_s23, %s1766_s23   ;;  %s1411_s22 = sphi %s1464_s22, %s1765_s22   ;;  %s1407_s21 = sphi %s1462_s21, %s1764_s21  }
   0x5   : > { %s1487_s27 = sadd.s32 1, %s1419_s24   ;;  %s163_s28 = sadd.s32 1, %s1415_s23 }
   0x6   : > { %s160_s29 = ssub.s32 %s1419_s24, %s1487_s27  ;;  %p173_p0 = scmp.ne.s32.totalorder %s1415_s23, %s1411_s22 }
   0x7   : > { %p161_p1 = scmp.eq.s32.totalorder %s160_s29, 0  ;;  %p174_p2 = scmp.eq.s32.totalorder %s1483_s25, 3 }
   0x8   : > { %p179_p3 = scmp.ne.s32.totalorder %s1411_s22, %s1407_s21  ;;  %p180_p4 = scmp.eq.s32.totalorder %s950_s26, 3 }
   0x9   : > { %s1498_s30 = scalar_select %p161_p1, %s1415_s23, %s163_s28  }
   0xa   : > { %p1500_p5 = por %p174_p2, %p173_p0  ;;  %p1504_p6 = por %p180_p4, %p179_p3 }
   0xb   : > { %p951_p7 = scmp.ge.s32.totalorder %s1419_s24, 1  ;;  %p187_p8 = scmp.lt.s32.totalorder %s1419_s24, 5 }
   0xc   : > { %s1753_s7 = scalar_select %p1500_p5, 1, 0 }
   0xd   : > { %s1754_s8 = scalar_select %p1504_p6, 1, 0 }
   0xe   : > { %p1750_p9 = scmp.eq.s32.totalorder %s1483_s25, 0  ;;  %p1511_p10 = pnand %p951_p7, %p187_p8 }
   0xf   : > { %s1421_s10 = smov [#allocation2]   ;;  %s1325_s15 = scalar_lea.hbm %s1745_s2, 512 }
  0x10   : > { %s1755_s9 = scalar_select %p1511_p10, 1, 0 }
  0x11   : > { %s199_s11 = sshll.u32 %s1421_s10, 4  ;;  %p1261_p11 = pneg %p1511_p10  ;;  %s200_s11 = int_to_ptr.vmem [resolvable:$true] %s199_s11 }
  0x12   : > { %p1326_p13 = scmp.ne.s32.totalorder %s1745_s2, %s1325_s15  ;;  %p1332_p3 = scmp.lt.u32.totalorder %s1325_s15, %s1745_s2 }
  0x13   : > { %p1519_p12 = pnand %p1750_p9, %p1261_p11 }
  0x15   : > { %p1327_p0 = pneg %p1519_p12 }
  0x17   : > { %p1328_p1 = pnand %p1327_p0, %p1326_p13 }
  0x19   : > { %p1329_p2 = pneg %p1328_p1 }
  0x1b   : > { %p1334_p4 = pnand %p1332_p3, %p1329_p2 }
  0x1d   : > { %1337 = shalt.err (!%p1334_p4)
}
  0x1e   : > { %s1338_s20 = scalar_lea.vmem %s200_s11, 512  ;;  %p1346_p9 = scmp.lt.s32.totalorder %s200_s11, %s200_s11 }
  0x1f   : > { %p1339_p7 = scmp.ne.s32.totalorder %s200_s11, %s1338_s20  ;;  %p1347_p6 = scmp.lt.s32.totalorder %s1338_s20, %s1338_s20 }
  0x21   : > { %p1341_p8 = pnand %p1339_p7, %p1327_p0  ;;  %p1348_p5 = por %p1347_p6, %p1346_p9 }
  0x23   : > { %p1342_p11 = pneg %p1341_p8 }
  0x25   : > { %p1349_p10 = pnand %p1348_p5, %p1342_p11 }
  0x27   : > { %1352 = shalt.err (!%p1349_p10)
}
  0x28   : > { %s1422_s26 = smov 128   ;;  %s1423_s28 = smov 8  }
  0x29   : > { %1264 = dma.hbm_to_vmem [thread:$0]  (!%p1519_p12), %s1745_s2, 512, %s200_s11, [#allocation3], %s1422_s26, %s1422_s26, %s1423_s28  }
  0x2a   : > { %p1757_p13 = scmp.ne.s32.totalorder %s1755_s9, 0 }
  0x2b   : > { %p1758_p1 = scmp.eq.s32.totalorder (!%p1757_p13), %s1483_s25, 0 }
  0x2c   : > { %240 = sbr.rel (%p1757_p13) target bundleno = 996 (0x3e4), region = 44 }
  0x33   : > { %1398 = dma.done.wait (%p1758_p1), [#allocation3], 512   ;;  %p1759_p0 = pmov %p1758_p1 }
  0x34   : > { %p275_p5 = scmp.lt.s32.totalorder %s1483_s25, 3  ;;  %vm301_vm0 = vcmask 523264   ;;  %v431_v11 = vld [vmem:[#allocation2] sm:$0xff]  ;;  %v432_v12 = vld [vmem:[#allocation2 + $0x8] sm:$0xff]  ;;  %v433_v15 = vld [vmem:[#allocation2 + $0x10] sm:$0xff]  ;;  %vm442_vm1 = vcmask 261120  }
  0x35   : > { %1400 = vsyncadd (%p1759_p0), [#allocation3], 4294966784  ;;  %v1199_v14 = vpack.c.bf16 %v432_v12, %v431_v11  ;;  %v434_v16 = vld [vmem:[#allocation2 + $0x18] sm:$0xff]  ;;  %v580_v26 = vld [vmem:[%s1747_s4] sm:$0xff]  ;;  %s272_s10 = sand.u32 1, %s1411_s22   ;;  %s994_s12 = sshll.u32 %s1483_s25, 10 }
  0x36   : > { %s276_s13 = scalar_select %p275_p5, %s1483_s25, 3  ;;  %v1203_v17 = vpack.c.bf16 %v434_v16, %v433_v15  ;;  %v581_v27 = vld [vmem:[%s1747_s4 + $0x8] sm:$0xff]  ;;  %v582_v29 = vld [vmem:[%s1747_s4 + $0x10] sm:$0xff]  ;;  %v583_v30 = vld [vmem:[%s1747_s4 + $0x18] sm:$0xff] }
  0x37   : > { %1200 = vmatprep.subr.bf16.mxu1 %v1199_v14  ;;  %v1207_v28 = vpack.c.bf16 %v581_v27, %v580_v26  ;;  %v1211_v33 = vpack.c.bf16 %v583_v30, %v582_v29  ;;  %v584_v34 = vld [vmem:[%s1747_s4 + $0x20] sm:$0xff]  ;;  %v585_v35 = vld [vmem:[%s1747_s4 + $0x28] sm:$0xff]  ;;  %v586_v39 = vld [vmem:[%s1747_s4 + $0x30] sm:$0xff]  ;;  %s1694_s11 = scalar_lea.hbm %s1749_s6, %s994_s12  ;;  %s1702_s25 = scalar_lea.sflag [#allocation4], %s272_s10 }
  0x38   : > { %s992_s14 = sshll.u32 %s276_s13, 6  ;;  %1202 = vmatpush3.bf16.msra.mxu1 %v1199_v14  ;;  %v1215_v38 = vpack.c.bf16 %v585_v35, %v584_v34  ;;  %v587_v40 = vld [vmem:[%s1747_s4 + $0x38] sm:$0xff]  ;;  %v588_v44 = vld [vmem:[%s1747_s4 + $0x40] sm:$0xff]  ;;  %v589_v45 = vld [vmem:[%s1747_s4 + $0x48] sm:$0xff]  ;;  %s956_s13 = sshll.u32 %s272_s10, 6 }
  0x39   : > { %s279_s16 = scalar_lea.vmem %s1743_s0, %s992_s14  ;;  %s1553_s9 = scalar_lea.vmem %s1744_s1, %s992_s14  ;;  %1204 = vmatprep.subr.bf16.mxu1 %v1203_v17  ;;  %v1219_v43 = vpack.c.bf16 %v587_v40, %v586_v39  ;;  %v1223_v48 = vpack.c.bf16 %v589_v45, %v588_v44  ;;  %v590_v49 = vld [vmem:[%s1747_s4 + $0x50] sm:$0xff]  ;;  %v591_v50 = vld [vmem:[%s1747_s4 + $0x58] sm:$0xff]  ;;  %v592_v52 = vld [vmem:[%s1747_s4 + $0x60] sm:$0xff]  ;;  %v813_v39 = vlaneseq }
  0x3a   : > { %v285_v0 = vld [vmem:[%s279_s16] sm:$0xff]  ;;  %v286_v1 = vld [vmem:[%s279_s16 + $0x8] sm:$0xff]  ;;  %v287_v2 = vld [vmem:[%s279_s16 + $0x10] sm:$0xff]  ;;  %v1227_v51 = vpack.c.bf16 %v591_v50, %v590_v49  ;;  %s274_s14 = scalar_lea.vmem [#allocation5], %s956_s13  ;;  %p1762_p9 = scmp.ne.s32.totalorder %s1753_s7, 0 }
  0x3b   : > { %v1183_v3 = vpack.c.bf16 %v286_v1, %v285_v0  ;;  %v288_v4 = vld [vmem:[%s279_s16 + $0x18] sm:$0xff]  ;;  %v289_v6 = vld [vmem:[%s279_s16 + $0x20] sm:$0xff]  ;;  %v290_v7 = vld [vmem:[%s279_s16 + $0x28] sm:$0xff]  ;;  %s864_s15 = sshll.u32 %s274_s14, 4  ;;  %s1424_s18 = smov [#allocation5]   ;;  %s1689_s15 = int_to_ptr.vmem [resolvable:$true] %s864_s15 }
  0x3c   : > { %v1187_v5 = vpack.c.bf16 %v288_v4, %v287_v2  ;;  %v293_v8 = vld [vmem:[%s1553_s9] sm:$0xff]  ;;  %v1191_v9 = vpack.c.bf16 %v290_v7, %v289_v6  ;;  %v291_v10 = vld [vmem:[%s279_s16 + $0x30] sm:$0xff]  ;;  %v292_v13 = vld [vmem:[%s279_s16 + $0x38] sm:$0xff]  ;;  %1206 = vmatpush3.bf16.msra.mxu1 %v1203_v17  ;;  %s1357_s19 = sshll.u32 %s1424_s18, 4  ;;  %s1358_s19 = int_to_ptr.vmem [resolvable:$false] %s1357_s19 }
  0x3d   : > { %1184 = vmatprep.subr.bf16.mxu0 %v1183_v3  ;;  %1079 = vmatprep.mubr.msk.f32.mxu0 %vm301_vm0, %v293_v8  ;;  %v1195_v18 = vpack.c.bf16 %v292_v13, %v291_v10  ;;  %v1558_v19 = vld [vmem:[%s1553_s9 + $0x8] sm:$0xff]  ;;  %v1561_v20 = vld [vmem:[%s1553_s9 + $0x10] sm:$0xff]  ;;  %v1568_v21 = vld [vmem:[%s1553_s9 + $0x18] sm:$0xff]  ;;  %s1359_s20 = scalar_lea.vmem %s1358_s19, 2048  ;;  %p1360_p2 = scmp.lt.s32.totalorder %s1689_s15, %s1358_s19 }
  0x3e   : > { %1186 = vmatpush3.bf16.msra.mxu0 %v1183_v3  ;;  %v1571_v22 = vld [vmem:[%s1553_s9 + $0x20] sm:$0xff]  ;;  %v1578_v23 = vld [vmem:[%s1553_s9 + $0x28] sm:$0xff]  ;;  %v1581_v24 = vld [vmem:[%s1553_s9 + $0x30] sm:$0xff]  ;;  %1208 = vmatprep.subr.bf16.mxu1 %v1207_v28 }
  0x3f   : > { %1188 = vmatprep.subr.bf16.mxu0 %v1187_v5  ;;  %v1588_v25 = vld [vmem:[%s1553_s9 + $0x38] sm:$0xff]  ;;  %v593_v53 = vld [vmem:[%s1747_s4 + $0x68] sm:$0xff]  ;;  %v594_v55 = vld [vmem:[%s1747_s4 + $0x70] sm:$0xff]  ;;  %s1353_s9 = scalar_lea.vmem %s1689_s15, 1024 }
  0x40   : > { %v1231_v54 = vpack.c.bf16 %v593_v53, %v592_v52  ;;  %v595_v56 = vld [vmem:[%s1747_s4 + $0x78] sm:$0xff]  ;;  %v969_v58 = vld [vmem:[%s1746_s3] ss:$0 sm:$0xff]  ;;  %p1354_p6 = scmp.ne.s32.totalorder %s1689_s15, %s1353_s9  ;;  %p1361_p3 = scmp.lt.s32.totalorder %s1359_s20, %s1353_s9 }
  0x41   : > { %v1235_v57 = vpack.c.bf16 %v595_v56, %v594_v55 }
  0x42   : > { %1190 = vmatpush3.bf16.msra.mxu0 %v1187_v5  ;;  %p1355_p10 = pnand %p1354_p6, %p1762_p9  ;;  %p1362_p4 = por %p1361_p3, %p1360_p2 }
  0x43   : > { %1192 = vmatprep.subr.bf16.mxu0 %v1191_v9 }
  0x44   : > { %p1356_p12 = pneg %p1355_p10 }
  0x46   : > { %1194 = vmatpush3.bf16.msra.mxu0 %v1191_v9  ;;  %p1363_p7 = pnand %p1362_p4, %p1356_p12 }
  0x47   : > { %1196 = vmatprep.subr.bf16.mxu0 %v1195_v18 }
  0x4a   : > { %1198 = vmatpush3.bf16.msra.mxu0 %v1195_v18 }
  0x4d   : > { %1080 = vmatmul.mubr.msk.f32.vlgmr.msra.gmra.mrb[0].mxu0 %vm301_vm0, %v1558_v19 }
  0x4e   : > { %1082 = vmatprep.mubr.msk.f32.mxu0 %vm301_vm0, %v1561_v20 }
  0x51   : > { %1083 = vmatmul.mubr.msk.f32.gmra.mrb[2].mxu0 %vm301_vm0, %v1568_v21 }
  0x52   : > { %1085 = vmatprep.mubr.msk.f32.mxu0 %vm301_vm0, %v1571_v22 }
  0x55   : > { %1086 = vmatmul.mubr.msk.f32.gmra.mrb[4].mxu0 %vm301_vm0, %v1578_v23 }
  0x56   : > { %1088 = vmatprep.mubr.msk.f32.mxu0 %vm301_vm0, %v1581_v24 }
  0x59   : > { %1089 = vmatmul.mubr.msk.f32.gmra.mrb[6].mxu0 %vm301_vm0, %v1588_v25 }
  0x5a   : > { %1171 = vmatprep.mubr.msk.f32.mxu0 %vm301_vm0, %v293_v8 }
 0x120   : > { %v1081_v31 = vpop.f32.mrb[0].mxu0 }
 0x121   : > { %v392_v32 = vpop.f32.mrb[1].mxu0 }
 0x122   : > { %1099 = vmatprep.mubr.msk.f32.mxu1 %vm442_vm1, %v392_v32 }
 0x123   : > { %1100 = vmatmul.mubr.msk.f32.vlgmr.msra.gmra.mrb[0].mxu1 %vm442_vm1, %v1081_v31 }
 0x124   : > { %v1084_v36 = vpop.f32.mrb[2].mxu0  ;;  %1210 = vmatpush3.bf16.msra.mxu1 %v1207_v28 }
 0x125   : > { %v402_v37 = vpop.f32.mrb[3].mxu0  ;;  %1212 = vmatprep.subr.bf16.mxu1 %v1211_v33 }
 0x126   : > { %1102 = vmatprep.mubr.msk.f32.mxu1 %vm442_vm1, %v402_v37 }
 0x127   : > { %1103 = vmatmul.mubr.msk.f32.gmra.mrb[2].mxu1 %vm442_vm1, %v1084_v36 }
 0x128   : > { %v1087_v41 = vpop.f32.mrb[4].mxu0  ;;  %1214 = vmatpush3.bf16.msra.mxu1 %v1211_v33 }
 0x129   : > { %v412_v42 = vpop.f32.mrb[5].mxu0  ;;  %1216 = vmatprep.subr.bf16.mxu1 %v1215_v38 }
 0x12a   : > { %1105 = vmatprep.mubr.msk.f32.mxu1 %vm442_vm1, %v412_v42 }
 0x12b   : > { %1106 = vmatmul.mubr.msk.f32.gmra.mrb[4].mxu1 %vm442_vm1, %v1087_v41 }
 0x12c   : > { %v1090_v46 = vpop.f32.mrb[6].mxu0  ;;  %1218 = vmatpush3.bf16.msra.mxu1 %v1215_v38 }
 0x12d   : > { %v422_v47 = vpop.f32.mrb[7].mxu0  ;;  %1220 = vmatprep.subr.bf16.mxu1 %v1219_v43 }
 0x12e   : > { %1108 = vmatprep.mubr.msk.f32.mxu1 %vm442_vm1, %v422_v47 }
 0x12f   : > { %1109 = vmatmul.mubr.msk.f32.gmra.mrb[6].mxu1 %vm442_vm1, %v1090_v46 }
 0x130   : > { %1222 = vmatpush3.bf16.msra.mxu1 %v1219_v43  ;;  %v814_v43 = vand.u32 127, %v813_v39 }
 0x131   : > { %1224 = vmatprep.subr.bf16.mxu1 %v1223_v48 }
 0x132   : > { %vm815_vm2 = vcmp.ge.s32.totalorder %v814_v43, 16  ;;  %vm816_vm3 = vcmp.lt.s32.totalorder %v814_v43, 32 }
 0x133   : > { %vm1672_vm4 = vmand %vm815_vm2, %vm816_vm3 }
 0x134   : > { %1226 = vmatpush3.bf16.msra.mxu1 %v1223_v48 }
 0x135   : > { %1228 = vmatprep.subr.bf16.mxu1 %v1227_v51 }
 0x138   : > { %1230 = vmatpush3.bf16.msra.mxu1 %v1227_v51 }
 0x139   : > { %1232 = vmatprep.subr.bf16.mxu1 %v1231_v54 }
 0x13c   : > { %1234 = vmatpush3.bf16.msra.mxu1 %v1231_v54 }
 0x13d   : > { %1236 = vmatprep.subr.bf16.mxu1 %v1235_v57 }
 0x140   : > { %1238 = vmatpush3.bf16.msra.mxu1 %v1235_v57 }
 0x1f6   : > { %v1101_v59 = vpop.f32.mrb[0].mxu1 }
 0x1f7   : > { %v539_v60 = vadd.f32 %v1101_v59, %v969_v58  ;;  %v533_v61 = vpop.f32.mrb[1].mxu1 }
 0x1f8   : > { %v534_v62 = vadd.f32 %v969_v58, %v533_v61 }
 0x1f9   : > { %v573_v1 = vmax.f32 %v539_v60, 0.0 }
 0x1fa   : > { %v572_v63 = vmax.f32 %v534_v62, 0.0  ;;  %v1104_v0 = vpop.f32.mrb[2].mxu1 }
 0x1fb   : > { %v549_v2 = vadd.f32 %v1104_v0, %v969_v58  ;;  %v543_v3 = vpop.f32.mrb[3].mxu1 }
 0x1fc   : > { %v544_v4 = vadd.f32 %v969_v58, %v543_v3  ;;  %1143 = vmatprep.mubr.f32.mxu1 %v572_v63 }
 0x1fd   : > { %1144 = vmatmul.mubr.f32.vlgmr.msra.gmra.mrb[8].mxu1 %v573_v1  ;;  %v575_v7 = vmax.f32 %v549_v2, 0.0 }
 0x1fe   : > { %v574_v5 = vmax.f32 %v544_v4, 0.0  ;;  %v1107_v6 = vpop.f32.mrb[4].mxu1 }
 0x1ff   : > { %v559_v8 = vadd.f32 %v1107_v6, %v969_v58  ;;  %v553_v9 = vpop.f32.mrb[5].mxu1 }
 0x200   : > { %v554_v10 = vadd.f32 %v969_v58, %v553_v9  ;;  %1146 = vmatprep.mubr.f32.mxu1 %v574_v5 }
 0x201   : > { %1147 = vmatmul.mubr.f32.gmra.mrb[10].mxu1 %v575_v7  ;;  %v577_v13 = vmax.f32 %v559_v8, 0.0 }
 0x202   : > { %v576_v11 = vmax.f32 %v554_v10, 0.0  ;;  %v1110_v12 = vpop.f32.mrb[6].mxu1 }
 0x203   : > { %v569_v14 = vadd.f32 %v1110_v12, %v969_v58  ;;  %v563_v15 = vpop.f32.mrb[7].mxu1 }
 0x204   : > { %v564_v16 = vadd.f32 %v969_v58, %v563_v15  ;;  %1149 = vmatprep.mubr.f32.mxu1 %v576_v11 }
 0x205   : > { %1150 = vmatmul.mubr.f32.gmra.mrb[12].mxu1 %v577_v13  ;;  %v579_v18 = vmax.f32 %v569_v14, 0.0 }
 0x206   : > { %v578_v17 = vmax.f32 %v564_v16, 0.0 }
 0x208   : > { %1152 = vmatprep.mubr.f32.mxu1 %v578_v17 }
 0x209   : > { %1153 = vmatmul.mubr.f32.gmra.mrb[14].mxu1 %v579_v18 }
 0x2d0   : > { %v1145_v26 = vpop.f32.mrb[8].mxu1 }
 0x2d1   : > { %v662_v27 = vpop.f32.mrb[9].mxu1 }
 0x2d2   : > { %v1239_v28 = vpack.c.bf16 %v1145_v26, %v662_v27 }
 0x2d4   : > { %v1148_v29 = vpop.f32.mrb[10].mxu1  ;;  %1240 = vmatprep.subr.bf16.mxu0 %v1239_v28 }
 0x2d5   : > { %v672_v30 = vpop.f32.mrb[11].mxu1  ;;  %1242 = vmatpush3.bf16.msra.mxu0 %v1239_v28 }
 0x2d6   : > { %v1243_v31 = vpack.c.bf16 %v1148_v29, %v672_v30 }
 0x2d8   : > { %v1151_v32 = vpop.f32.mrb[12].mxu1  ;;  %1244 = vmatprep.subr.bf16.mxu0 %v1243_v31 }
 0x2d9   : > { %v682_v33 = vpop.f32.mrb[13].mxu1  ;;  %1246 = vmatpush3.bf16.msra.mxu0 %v1243_v31 }
 0x2da   : > { %v1247_v34 = vpack.c.bf16 %v1151_v32, %v682_v33 }
 0x2dc   : > { %v1154_v35 = vpop.f32.mrb[14].mxu1  ;;  %1248 = vmatprep.subr.bf16.mxu0 %v1247_v34 }
 0x2dd   : > { %v692_v36 = vpop.f32.mrb[15].mxu1  ;;  %1250 = vmatpush3.bf16.msra.mxu0 %v1247_v34 }
 0x2de   : > { %v1251_v37 = vpack.c.bf16 %v1154_v35, %v692_v36 }
 0x2e0   : > { %1252 = vmatprep.subr.bf16.mxu0 %v1251_v37 }
 0x2e1   : > { %1254 = vmatpush3.bf16.msra.mxu0 %v1251_v37 }
 0x2e4   : > { %1172 = vmatmul.mubr.msk.f32.vlgmr.msra.gmra.mrb[8].mxu0 %vm301_vm0, %v1558_v19  ;;  %v978_v19 = vld [vmem:[%s1748_s5] ss:$0 sm:$0xff] }
 0x2e5   : > { %1174 = vmatprep.mubr.msk.f32.mxu0 %vm301_vm0, %v1561_v20 }
 0x2e8   : > { %1175 = vmatmul.mubr.msk.f32.gmra.mrb[10].mxu0 %vm301_vm0, %v1568_v21 }
 0x2e9   : > { %1177 = vmatprep.mubr.msk.f32.mxu0 %vm301_vm0, %v1571_v22 }
 0x2ec   : > { %1178 = vmatmul.mubr.msk.f32.gmra.mrb[12].mxu0 %vm301_vm0, %v1578_v23 }
 0x2ed   : > { %1180 = vmatprep.mubr.msk.f32.mxu0 %vm301_vm0, %v1581_v24 }
 0x2f0   : > { %1181 = vmatmul.mubr.msk.f32.gmra.mrb[14].mxu0 %vm301_vm0, %v1588_v25 }
 0x3b7   : > { %v1173_v20 = vpop.f32.mrb[8].mxu0 }
 0x3b8   : > { %v780_v38 = vadd.f32 %v1173_v20, %v978_v19  ;;  %v774_v21 = vpop.f32.mrb[9].mxu0 }
 0x3b9   : > { %v775_v40 = vadd.f32 %v978_v19, %v774_v21 }
 0x3ba   : > { %v820_v22 = vmul.f32 1.442695, %v780_v38 }
 0x3bb   : > { %v818_v41 = vmul.f32 1.442695, %v775_v40  ;;  %v1176_v42 = vpop.f32.mrb[10].mxu0 }
 0x3bc   : > { %1309 = vpow2.f32 %v820_v22  ;;  %v790_v23 = vadd.f32 %v1176_v42, %v978_v19  ;;  %v784_v24 = vpop.f32.mrb[11].mxu0 }
 0x3bd   : > { %1311 = vpow2.f32 %v818_v41  ;;  %v785_v25 = vadd.f32 %v978_v19, %v784_v24 }
 0x3be   : > { %v824_v44 = vmul.f32 1.442695, %v790_v23 }
 0x3bf   : > { %v822_v45 = vmul.f32 1.442695, %v785_v25  ;;  %v1179_v46 = vpop.f32.mrb[12].mxu0 }
 0x3c0   : > { %1313 = vpow2.f32 %v824_v44  ;;  %v800_v47 = vadd.f32 %v1179_v46, %v978_v19  ;;  %v794_v48 = vpop.f32.mrb[13].mxu0 }
 0x3c1   : > { %1315 = vpow2.f32 %v822_v45  ;;  %v795_v49 = vadd.f32 %v978_v19, %v794_v48 }
 0x3c2   : > { %v828_v50 = vmul.f32 1.442695, %v800_v47 }
 0x3c3   : > { %v826_v51 = vmul.f32 1.442695, %v795_v49  ;;  %v1182_v52 = vpop.f32.mrb[14].mxu0 }
 0x3c4   : > { %1317 = vpow2.f32 %v828_v50  ;;  %v810_v54 = vadd.f32 %v1182_v52, %v978_v19  ;;  %v804_v55 = vpop.f32.mrb[15].mxu0 }
 0x3c5   : > { %1319 = vpow2.f32 %v826_v51  ;;  %v805_v56 = vadd.f32 %v978_v19, %v804_v55 }
 0x3c6   : > { %v1310_v57 = vpop.eup %1309  ;;  %v832_v58 = vmul.f32 1.442695, %v810_v54 }
 0x3c7   : > { %v1312_v59 = vpop.eup %1311  ;;  %v835_v60 = vsel %vm1672_vm4, %v1310_v57, %v780_v38  ;;  %v830_v61 = vmul.f32 1.442695, %v805_v56 }
 0x3c8   : > { %843 = vst [vmem:[%s274_s14 + $0x8] sm:$0xff] %v835_v60  ;;  %v834_v62 = vsel %vm1672_vm4, %v1312_v59, %v775_v40  ;;  %1321 = vpow2.f32 %v832_v58 }
 0x3c9   : > { %842 = vst [vmem:[%s274_s14] sm:$0xff] %v834_v62  ;;  %1323 = vpow2.f32 %v830_v61 }
 0x3ca   : > { %v1314_v63 = vpop.eup %1313 }
 0x3cb   : > { %v1316_v0 = vpop.eup %1315  ;;  %v837_v1 = vsel %vm1672_vm4, %v1314_v63, %v790_v23 }
 0x3cc   : > { %845 = vst [vmem:[%s274_s14 + $0x18] sm:$0xff] %v837_v1  ;;  %v836_v2 = vsel %vm1672_vm4, %v1316_v0, %v785_v25 }
 0x3cd   : > { %844 = vst [vmem:[%s274_s14 + $0x10] sm:$0xff] %v836_v2 }
 0x3ce   : > { %v1318_v3 = vpop.eup %1317 }
 0x3cf   : > { %v1320_v4 = vpop.eup %1319  ;;  %v839_v5 = vsel %vm1672_vm4, %v1318_v3, %v800_v47 }
 0x3d0   : > { %847 = vst [vmem:[%s274_s14 + $0x28] sm:$0xff] %v839_v5  ;;  %v838_v6 = vsel %vm1672_vm4, %v1320_v4, %v795_v49 }
 0x3d1   : > { %846 = vst [vmem:[%s274_s14 + $0x20] sm:$0xff] %v838_v6 }
 0x3d2   : > { %v1322_v7 = vpop.eup %1321 }
 0x3d3   : > { %v1324_v8 = vpop.eup %1323  ;;  %v841_v9 = vsel %vm1672_vm4, %v1322_v7, %v810_v54 }
 0x3d4   : > { %849 = vst [vmem:[%s274_s14 + $0x38] sm:$0xff] %v841_v9  ;;  %v840_v10 = vsel %vm1672_vm4, %v1324_v8, %v805_v56 }
 0x3d5   : > { %848 = vst [vmem:[%s274_s14 + $0x30] sm:$0xff] %v840_v10 }
 0x3d6   : > { %1366 = shalt.err (!%p1363_p7)
}
 0x3d7   : > { %s1367_s26 = scalar_lea.hbm %s1694_s11, 1024  ;;  %s1371_s10 = scalar_lea.hbm %s1749_s6, 4096 }
 0x3d8   : > { %p1368_p8 = scmp.ne.s32.totalorder %s1694_s11, %s1367_s26  ;;  %p1372_p1 = scmp.lt.u32.totalorder %s1694_s11, %s1749_s6 }
 0x3d9   : > { %p1373_p0 = scmp.lt.u32.totalorder %s1371_s10, %s1367_s26  ;;  %p1375_p6 = scmp.lt.u32.totalorder %s1367_s26, %s1694_s11 }
 0x3da   : > { %p1369_p11 = pnand %p1368_p8, %p1762_p9 }
 0x3db   : > { %p1374_p5 = por %p1373_p0, %p1372_p1 }
 0x3dc   : > { %p1370_p13 = pneg %p1369_p11 }
 0x3dd   : > { %p1376_p10 = por %p1375_p6, %p1374_p5 }
 0x3df   : > { %p1377_p12 = pnand %p1376_p10, %p1370_p13 }
 0x3e1   : > { %1380 = shalt.err (!%p1377_p12)
}
 0x3e2   : > { %s1425_s12 = smov 128   ;;  %s1426_s16 = smov 8  }
 0x3e3   : > { %1259 = dma.vmem_to_hbm [thread:$0]  (%p1762_p9), %s1689_s15, 1024, %s1694_s11, %s1702_s25, %s1425_s12, %s1425_s12, %s1426_s16  }
 0x3e4 PF: > { %p1271_p2 = scmp.ge.s32.totalorder %s1419_s24, 2  ;;  %s879_s17 = sand.u32 1, %s1407_s21  }
 0x3e5   : > { %p1763_p3 = scmp.ne.s32.totalorder %s1754_s8, 0  ;;  %s880_s9 = scalar_lea.sflag [#allocation4], %s879_s17 }
 0x3e7   : > { %p1266_p4 = pnand %p1271_p2, %p1763_p3 }
 0x3e9   : > { %1402 = dma.done.wait (!%p1266_p4), %s880_s9, 1024  }
 0x3ea   : > { %1404 = vsyncadd (!%p1266_p4), %s880_s9, 4294966272  ;;  %p17_p7 = scmp.ge.s32.totalorder %s1487_s27, 6   ;;  %s1764_s21 = smov %s1411_s22 }
 0x3eb   : > { %s1765_s22 = smov %s1415_s23  ;;  %s1766_s23 = smov %s1498_s30 }
 0x3ec   : > { %s1767_s24 = smov %s1487_s27  ;;  %19 = sbr.rel (!%p17_p7) target bundleno = 4 (0x4), region = 87 }
 0x3f3   :  { %885 = vsyncpa [#allocation3], 1 }
 0x3f4   :  { %887 = vsyncpa [#allocation3 + $0x1], 1 }
 0x3f5   :  { %888 = vsyncpa [#allocation4], 1 }
 0x3f6   :  { %890 = vsyncpa [#allocation4 + $0x1], 1 }

</bundles_post_ra>
